<compile_context>
chip_gen: v6e
topology: v6e:2x2x1
jax: 0.10.0
libtpu: 0.0.40
codegen_flags: <defaults>
</compile_context>

<pallas_src>
import functools

import jax
import jax.numpy as jnp
from jax.experimental import pallas as pl
from jax.experimental.pallas import tpu as pltpu


def _discriminator_kernel(
    xt_ref,                                   # (16, L)  block-0 im2col of the input (rows 9..15 zero)
    w0_ref, g0_ref, b0_ref,                   # (Hd, 16), (Hd, 1) x2
    w1_ref, g1_ref, b1_ref,                   # (2Hd, 9Hd), (2Hd, 1) x2
    w2_ref, g2_ref, b2_ref,                   # (4Hd, 18Hd), (4Hd, 1) x2
    w3_ref, g3_ref, b3_ref,                   # (8, 36Hd), (8, 1) x2   (row 0 real)
    w4_ref, bias4_ref,                        # (8, 72), (1, 1)        (row 0 real)
    o_ref,                                    # (1, L) lane-dense output map
    p1_ref, p2_ref, p3_ref, p4_ref,           # (9*C, L) sublane-stacked im2col scratch
    *, n_batch, img_h, img_w, lanes, roll_like_jnp,
):
    tot = n_batch * img_h * img_w
    taps = [kh * img_w + kw for kh in range(3) for kw in range(3)]

    # Per-lane (h, w) coordinates, computed once; used to mask BN statistics to
    # the valid (non-garbage) region of each layer.
    pos = jax.lax.broadcasted_iota(jnp.int32, (1, lanes), 1)
    hw = pos % (img_h * img_w)
    hh = hw // img_w
    ww = hw % img_w
    in_img = pos < tot

    def valid_mask(layer):
        vh, vw = img_h - 2 * (layer + 1), img_w - 2 * (layer + 1)
        m = jnp.logical_and(in_img, jnp.logical_and(hh < vh, ww < vw))
        return m.astype(jnp.float32), float(n_batch * vh * vw)

    def bn_lrelu(y, layer, g_ref, b_ref):
        """Training-mode BatchNorm (biased stats over the valid region,
        two-pass variance) + LeakyReLU(0.2).  Lane reductions only."""
        mask, count = valid_mask(layer)
        inv_cnt = 1.0 / count
        mean = jnp.sum(y * mask, axis=1, keepdims=True) * inv_cnt     # (C, 1)
        d = y - mean
        var = jnp.sum(d * d * mask, axis=1, keepdims=True) * inv_cnt  # (C, 1)
        var = jnp.maximum(var, 0.0)
        z = d * jax.lax.rsqrt(var + 1e-5)
        z = z * g_ref[...] + b_ref[...]     # tiny; could be skipped for gamma=1/beta=0
        return jnp.where(z >= 0.0, z, 0.2 * z)

    def shift(act, s):
        """act[:, r] -> act[:, r + s] (wrapped tail only hits invalid lanes)."""
        if s == 0:
            return act
        amt = (lanes - s) if roll_like_jnp else s
        return pltpu.roll(act, amt, axis=1)

    def conv(act, p_ref, w_ref):
        """3x3 valid conv: stack the 9 lane-shifted taps along sublanes
        (aligned, full-width, unmasked stores) and contract once on the MXU in
        the lane-dense orientation (Co, 9*Ci) @ (9*Ci, L)."""
        ci = act.shape[0]
        for t, s in enumerate(taps):
            p_ref[pl.ds(t * ci, ci), :] = shift(act, s)
        return jnp.dot(w_ref[...], p_ref[...], preferred_element_type=jnp.float32)

    # ---- block 0: Conv(1 -> Hd); its im2col patch is pre-built in the wrapper.
    y0 = jnp.dot(w0_ref[...], xt_ref[...], preferred_element_type=jnp.float32)
    a0 = bn_lrelu(y0, 0, g0_ref, b0_ref)                        # (Hd, L)

    # ---- blocks 1 & 2: Conv(Hd -> 2Hd), Conv(2Hd -> 4Hd) ---------------------
    a1 = bn_lrelu(conv(a0, p1_ref, w1_ref), 1, g1_ref, b1_ref)  # (2Hd, L)
    a2 = bn_lrelu(conv(a1, p2_ref, w2_ref), 2, g2_ref, b2_ref)  # (4Hd, L)

    # ---- block 3: Conv(4Hd -> 1); weight rows 1..7 are zero, so only row 0 of
    # the result is real (the zero rows stay exactly zero through BN/LReLU).
    a3 = bn_lrelu(conv(a2, p3_ref, w3_ref), 3, g3_ref, b3_ref)  # (8, L), row 0 real

    # ---- block 4: Conv(1 -> 1) + bias (no BN / no ReLU); row 0 real ----------
    y4 = conv(a3, p4_ref, w4_ref)                               # (8, L)
    o_ref[...] = y4[0:1, :] + bias4_ref[...]


@functools.cache
def _roll_matches_jnp():
    """pltpu.roll's rotation direction is not spelled out in the API docs;
    probe it once (tiny kernel) so the tap shifts are correct either way."""
    def probe(x_ref, o_ref):
        o_ref[...] = pltpu.roll(x_ref[...], 1, axis=1)

    x = jnp.broadcast_to(jnp.arange(128, dtype=jnp.float32)[None, :], (8, 128))
    out = pl.pallas_call(
        probe, out_shape=jax.ShapeDtypeStruct((8, 128), jnp.float32))(x)
    # jnp.roll convention wraps the last element to the front.
    return bool(out[0, 0] == 127.0)


def _pallas_forward(image_nchw, params, *, roll_like_jnp=True):
    n, c, h, w = image_nchw.shape
    if c != 1:
        raise ValueError(
            "DiscriminadorGAN's last block is Conv2d(1, 1, ...); inChan must be 1.")
    if h < 11 or w < 11:
        raise ValueError("image too small for five 3x3 valid convolutions")
    hd = params["w0"].shape[-1]
    tot = n * h * w
    lanes = ((tot + 127) // 128) * 128        # lane-dense width (multiple of 128)
    taps = [kh * w + kw for kh in range(3) for kw in range(3)]
    s_max = 2 * w + 2
    assert max(taps) <= s_max                 # tap slices below stay in bounds

    # Flat lane-major input, zero-padded so every block-0 tap slice is in bounds.
    x_flat = jnp.pad(image_nchw.reshape(tot).astype(jnp.float32),
                     (0, lanes + s_max - tot))
    # Block-0 im2col (taps on sublanes): pure layout plumbing on the raw input.
    x_taps = jnp.stack([x_flat[s:s + lanes] for s in taps], axis=0)   # (9, L)
    x_taps = jnp.pad(x_taps, ((0, 7), (0, 0)))                        # (16, L)

    def ohwi(wk):                             # HWIO (3, 3, ci, co) -> (co, 9*ci)
        return wk.reshape(9 * wk.shape[2], wk.shape[3]).T

    def col(v):                               # (co,) -> (co, 1)
        return v.reshape(-1, 1).astype(jnp.float32)

    w0p = jnp.pad(ohwi(params["w0"]), ((0, 0), (0, 7)))               # (Hd, 16)
    # Blocks 3/4 have a single real output/input channel; pad their weights and
    # BN params to 8 sublane rows (the extra rows are exactly zero => harmless).
    w3p = jnp.zeros((8, 9 * 4 * hd), jnp.float32).at[0].set(ohwi(params["w3"])[0])
    w4p = jnp.zeros((8, 9 * 8), jnp.float32).at[0, 0:9 * 8:8].set(
        params["w4"].reshape(9))
    g3p = jnp.concatenate([col(params["gamma3"]), jnp.ones((7, 1), jnp.float32)])
    b3p = jnp.concatenate([col(params["beta3"]), jnp.zeros((7, 1), jnp.float32)])

    args = (
        x_taps,
        w0p, col(params["gamma0"]), col(params["beta0"]),
        ohwi(params["w1"]), col(params["gamma1"]), col(params["beta1"]),
        ohwi(params["w2"]), col(params["gamma2"]), col(params["beta2"]),
        w3p, g3p, b3p,
        w4p, params["b4"].reshape(1, 1).astype(jnp.float32),
    )

    vmem = pl.BlockSpec(memory_space=pltpu.MemorySpace.VMEM)
    kernel = functools.partial(
        _discriminator_kernel, n_batch=n, img_h=h, img_w=w,
        lanes=lanes, roll_like_jnp=roll_like_jnp)

    out_map = pl.pallas_call(
        kernel,
        out_shape=jax.ShapeDtypeStruct((1, lanes), jnp.float32),
        in_specs=[vmem] * len(args),
        out_specs=vmem,
        scratch_shapes=[
            pltpu.VMEM((9 * hd, lanes), jnp.float32),        # p1 (im2col, K=9*Hd)
            pltpu.VMEM((9 * 2 * hd, lanes), jnp.float32),    # p2 (K=18*Hd)
            pltpu.VMEM((9 * 4 * hd, lanes), jnp.float32),    # p3 (K=36*Hd)
            pltpu.VMEM((9 * 8, lanes), jnp.float32),         # p4 (K=72, row 0 real)
        ],
        compiler_params=pltpu.CompilerParams(
            vmem_limit_bytes=32 * 1024 * 1024),
    )(*args)

    hf, wf = h - 10, w - 10                   # 5 valid 3x3 convs, C_out = 1
    out = out_map[0, :tot].reshape(n, h, w)[:, :hf, :wf]
    return out.reshape(n, hf * wf)


_jit_forward = jax.jit(_pallas_forward, static_argnames=("roll_like_jnp",))


def discriminador_forward(image, params):
    # The roll-direction probe runs eagerly (outside jit) and is cached.
    return _jit_forward(image, params, roll_like_jnp=_roll_matches_jnp())


def init_params(key, in_chan=1, hidden_dim=8):
    """Deterministic parameters matching the module's layer shapes.

    Conv biases b0..b3 are generated for fidelity with nn.Conv2d but are unused
    by the kernel: training-mode BatchNorm cancels them exactly.
    """
    chans = [(in_chan, hidden_dim),
             (hidden_dim, hidden_dim * 2),
             (hidden_dim * 2, hidden_dim * 4),
             (hidden_dim * 4, in_chan),
             (1, 1)]
    params = {}
    for i, (ci, co) in enumerate(chans):
        key, kw_, kb_ = jax.random.split(key, 3)
        params[f"w{i}"] = jax.random.normal(kw_, (3, 3, ci, co), jnp.float32) * 0.1
        params[f"b{i}"] = jax.random.normal(kb_, (co,), jnp.float32) * 0.1
        params[f"gamma{i}"] = jnp.ones((co,), jnp.float32)   # BN default init
        params[f"beta{i}"] = jnp.zeros((co,), jnp.float32)
    return params


def _reference_forward(image_nchw, params):
    """Pure-JAX (XLA) reference matching the PyTorch module semantics."""
    x = image_nchw
    for i in range(5):
        wk, bk = params[f"w{i}"], params[f"b{i}"]
        x = jax.lax.conv_general_dilated(
            x, wk, window_strides=(1, 1), padding="VALID",
            dimension_numbers=("NCHW", "HWIO", "NCHW"))
        x = x + bk[None, :, None, None]
        if i < 4:                                            # BN + LeakyReLU
            mean = jnp.mean(x, axis=(0, 2, 3), keepdims=True)
            var = jnp.mean((x - mean) ** 2, axis=(0, 2, 3), keepdims=True)
            x = (x - mean) * jax.lax.rsqrt(var + 1e-5)
            x = (x * params[f"gamma{i}"][None, :, None, None]
                 + params[f"beta{i}"][None, :, None, None])
            x = jnp.where(x >= 0, x, 0.2 * x)
    return x.reshape(x.shape[0], -1)


if __name__ == "__main__":
    key = jax.random.PRNGKey(0)
    k_img, k_par = jax.random.split(key)

    N, C, H, W = 2, 1, 16, 16                 # inChan = 1, small hiddenDim = 8
    image = jax.random.normal(k_img, (N, C, H, W), jnp.float32)
    params = init_params(k_par, in_chan=C, hidden_dim=8)

    pred = discriminador_forward(image, params)
    jax.block_until_ready(pred)

    # Spatial: 16 ->14 ->12 ->10 ->8 ->6 ; final channels = 1  =>  (N, 36).
    assert pred.shape == (N, (H - 10) * (W - 10)), pred.shape
    assert bool(jnp.all(jnp.isfinite(pred)))

    ref = _reference_forward(image, params)
    max_err = float(jnp.max(jnp.abs(pred - ref)))
    assert max_err < 1e-3, f"mismatch vs reference: max abs err {max_err}"

    print("KERNEL_OK")
</pallas_src>

<mosaic_0001>
module attributes {stable_mosaic.version = 11 : i64} {
  func.func @probe(%arg0: memref<8x128xf32, #tpu.memory_space<vmem>>, %arg1: memref<8x128xf32, #tpu.memory_space<vmem>>) attributes {dimension_semantics = [], scalar_prefetch = 0 : i64, scratch_operands = 0 : i64, tpu.core_type = #tpu.core_type<tc>} {
    %c0 = arith.constant 0 : index
    %c0_0 = arith.constant 0 : index
    %0 = vector.load %arg0[%c0, %c0_0] : memref<8x128xf32, #tpu.memory_space<vmem>>, vector<8x128xf32>
    %c1_i32 = arith.constant 1 : i32
    %1 = tpu.dynamic_rotate %0 by %c1_i32 dim 1 : vector<8x128xf32>, i32 -> vector<8x128xf32>
    %c0_1 = arith.constant 0 : index
    %c0_2 = arith.constant 0 : index
    %2 = vector.load %arg1[%c0_1, %c0_2] : memref<8x128xf32, #tpu.memory_space<vmem>>, vector<8x128xf32>
    tpu.vector_store %arg1[%c0_1, %c0_2], %1 {strides = array<i32>} : memref<8x128xf32, #tpu.memory_space<vmem>>, vector<8x128xf32>,
    return
  }
}

</mosaic_0001>

<bundles_post_ra>
// kernel: tpu_custom_call.1
= control target key start
LH: loop header
LB: loop body
LE: loop exit
PB: predicated region body
PF: predicated region fallthrough
CT: control target
= control target key end

     0   :  { %6 = vsyncpa [#allocation3], 0  ;;  %s106_s0 = inlined_call_operand.hbm [shape: f32[8,128], index: 0, kind: input, shape index: {}]   ;;  %s107_s1 = inlined_call_operand.hbm [shape: f32[8,128], index: 1, kind: output, shape index: {}]  }
   0x1   :  { %7 = vsyncpa [#allocation4], 0  ;;  %s87_s6 = smov [#allocation2]  }
   0x2   :  { %s14_s7 = sshll.u32 %s87_s6, 4  ;;  %s15_s7 = int_to_ptr.vmem [resolvable:$true] %s14_s7 }
   0x3   :  { %s51_s8 = scalar_lea.vmem %s15_s7, 128  ;;  %p56_p1 = scmp.lt.s32.totalorder %s15_s7, %s15_s7 }
   0x4   :  { %p52_p0 = scmp.ne.s32.totalorder %s15_s7, %s51_s8  ;;  %p57_p2 = scmp.lt.s32.totalorder %s51_s8, %s51_s8 }
   0x6   :  { %p58_p3 = por %p57_p2, %p56_p1 }
   0x8   :  { %p59_p4 = pnand %p58_p3, %p52_p0 }
   0xa   :  { %62 = shalt.err (!%p59_p4)
}
   0xb   :  { %17 = dma.hbm_to_vmem [thread:$0]  %s106_s0, 128, %s15_s7, [#allocation3]  }
   0xc   :  { %83 = dma.done.wait [#allocation3], 128  }
   0xd   :  { %84 = vsyncadd [#allocation3], 4294967168  ;;  %v21_v0 = vld [vmem:[#allocation2] sm:$0xff]  ;;  %s88_s11 = smov 1   ;;  %s89_s12 = smov [#allocation5]  }
   0xe   :  { %22 = vrot.lane.b32.xlu0 %v21_v0, %s88_s11  ;;  %s31_s13 = sshll.u32 %s89_s12, 4  ;;  %s32_s13 = int_to_ptr.vmem [resolvable:$true] %s31_s13 }
   0xf   :  { %s63_s14 = scalar_lea.vmem %s32_s13, 128  ;;  %p68_p6 = scmp.lt.s32.totalorder %s32_s13, %s32_s13 }
  0x10   :  { %p64_p5 = scmp.ne.s32.totalorder %s32_s13, %s63_s14  ;;  %p69_p7 = scmp.lt.s32.totalorder %s63_s14, %s63_s14 }
  0x12   :  { %p70_p8 = por %p69_p7, %p68_p6 }
  0x14   :  { %p71_p9 = pnand %p70_p8, %p64_p5 }
  0x80   :  { %v23_v1 = vpop.permute.xlu0 %22 }
  0x81   :  { %24 = vst [vmem:[#allocation5] sm:$0xff] %v23_v1 }
  0x82   :  { %74 = shalt.err (!%p71_p9)
}
  0x83   :  { %34 = dma.vmem_to_hbm [thread:$0]  %s32_s13, 128, %s107_s1, [#allocation4]  }
  0x84   :  { %85 = dma.done.wait [#allocation4], 128  }
  0x85   :  { %86 = vsyncadd [#allocation4], 4294967168 }
  0x86   :  { %38 = vsyncpa [#allocation3], 1 }
  0x87   :  { %39 = vsyncpa [#allocation4], 1 }

</bundles_post_ra>
